<compile_context>
chip_gen: v6e
topology: v6e:2x2x1
jax: 0.10.0
libtpu: 0.0.40
codegen_flags: <defaults>
</compile_context>

<pallas_src>
import functools

import jax
import jax.numpy as jnp
from jax.experimental import pallas as pl
from jax.experimental.pallas import tpu as pltpu


_SQRT_HALF = 0.7071067811865476


def _gelu_f32(h, approximate):
    if approximate:
        # tanh-approx GELU: the transcendental goes to the EUP slot, freeing the VALU.
        return jax.nn.gelu(h, approximate=True)
    # Exact erf GELU (matches torch.nn.GELU() default).
    return 0.5 * h * (1.0 + jax.lax.erf(h * jnp.float32(_SQRT_HALF)))


def _ffn_kernel_resident(x_ref, w1_ref, b1_ref, w2_ref, b2_ref, o_ref, *, approx_gelu):
    """Whole hidden dim resident in VMEM: one fused pass, no accumulator scratch."""
    h = jnp.dot(x_ref[...], w1_ref[...], preferred_element_type=jnp.float32)
    h = h + b1_ref[...].astype(jnp.float32)
    h = _gelu_f32(h, approx_gelu)
    out = jnp.dot(h.astype(w2_ref.dtype), w2_ref[...], preferred_element_type=jnp.float32)
    o_ref[...] = (out + b2_ref[...].astype(jnp.float32)).astype(o_ref.dtype)


def _ffn_kernel_streamed(x_ref, w1_ref, b1_ref, w2_ref, b2_ref, o_ref, acc_ref, *, approx_gelu):
    """Hidden dim streamed in (P, TH)/(TH, P) slabs; f32 accumulator in VMEM scratch."""
    h_idx = pl.program_id(1)

    h = jnp.dot(x_ref[...], w1_ref[...], preferred_element_type=jnp.float32)
    h = h + b1_ref[...].astype(jnp.float32)
    h = _gelu_f32(h, approx_gelu)
    partial = jnp.dot(h.astype(w2_ref.dtype), w2_ref[...], preferred_element_type=jnp.float32)

    @pl.when(h_idx == 0)
    def _first():
        # First H slab: plain store (no zero-init + read-modify-write).
        acc_ref[...] = partial

    @pl.when(h_idx != 0)
    def _accumulate():
        acc_ref[...] += partial

    @pl.when(h_idx == pl.num_programs(1) - 1)
    def _finalize():
        o_ref[...] = (acc_ref[...] + b2_ref[...].astype(jnp.float32)).astype(o_ref.dtype)


def _round_up(x, m):
    return ((x + m - 1) // m) * m


def _vmem_budget_bytes():
    """~75% of per-core VMEM (headroom for compiler-internal scratch & double buffers)."""
    cap = None
    try:
        cap = getattr(pltpu.get_tpu_info(), "vmem_capacity_bytes", None)
    except Exception:
        cap = None
    if not cap:
        cap = 64 << 20  # conservative fallback: v7x per-TensorCore VMEM
    return int(cap) * 3 // 4


def _vmem_usage_bytes(tm, th, P, x_it, out_it, w_it, streamed):
    use = 2 * tm * P * x_it              # x tile (double-buffered)
    use += 2 * tm * P * out_it           # out tile (double-buffered)
    use += 2 * (P * th + th * P) * w_it  # w1 + w2 slabs (double-buffered)
    use += 2 * (th + P) * 4              # biases (kept f32)
    if streamed:
        use += tm * P * 4                # f32 accumulator scratch
    return use


def _choose_tiles(N, P, H, x_it, out_it, w_it, budget, tm_req):
    """Pick (token_tile, hidden_tile) fitting `budget`.

    Priority: full weight residency (th == H, weights DMA'd once) first, then the largest
    256-aligned token tile.  When N > 256 we ensure >= 2 token tiles so v7x's two
    TensorCores both get work (near-neutral on 1-TC v5e/v6e).
    """
    sublane = 16 if x_it == 2 else 8
    if N <= 256:
        tms = [_round_up(max(N, 1), sublane)]
    else:
        top = min(_round_up(tm_req, 256), max(256, _round_up(-(-N // 2), 256)))
        tms = list(range(top, 255, -256))

    ths = [H]
    if H % 128 == 0:
        step = 256 if H % 256 == 0 else 128   # 256-granular slabs for the 256x256 MXU
        t = H - step
        while t >= step:
            if H % t == 0:
                ths.append(t)
            t -= step

    for th in ths:            # residency (big th) first
        for tm in tms:        # then the biggest token tile that fits
            if _vmem_usage_bytes(tm, th, P, x_it, out_it, w_it, th < H) <= budget:
                return tm, th
    return tms[-1], ths[-1]


@functools.partial(jax.jit,
                   static_argnames=("tm", "th", "compute_dtype", "approximate_gelu"))
def feed_forward(x, w1, b1, w2, b2, *, tm=512, th=None,
                 compute_dtype=jnp.bfloat16, approximate_gelu=False):
    """x: (B, S, P) -> (B, S, P).  Weights are (in_features, out_features)."""
    B, S, P = x.shape
    H = w1.shape[1]
    N = B * S
    out_dtype = x.dtype

    cdt = jnp.dtype(compute_dtype) if compute_dtype is not None else jnp.dtype(x.dtype)
    x2 = x.reshape(N, P).astype(cdt)      # MXU-native operand dtype (bf16 by default)
    w1c = w1.astype(cdt)
    w2c = w2.astype(cdt)
    b1_2d = b1.reshape(1, H)              # biases stay at original precision
    b2_2d = b2.reshape(1, P)

    x_it = cdt.itemsize
    w_it = cdt.itemsize
    out_it = jnp.dtype(out_dtype).itemsize

    budget = _vmem_budget_bytes()
    if th is None:
        tm_eff, th_eff = _choose_tiles(N, P, H, x_it, out_it, w_it, budget, tm)
    else:
        th_eff = th if (0 < th <= H and H % th == 0) else H
        sublane = 16 if x_it == 2 else 8
        tm_eff = min(tm, _round_up(N, sublane if N <= 256 else 256))

    n_token_tiles = pl.cdiv(N, tm_eff)
    n_h_tiles = H // th_eff

    # HBM traffic model: weights read once when resident, once per token tile when streamed.
    weight_streams = 1 if n_h_tiles == 1 else int(n_token_tiles)
    cost = pl.CostEstimate(
        flops=4 * N * P * H,              # two matmuls, 2*N*P*H each
        transcendentals=N * H,            # GELU on the hidden activations
        bytes_accessed=int(N * P * x_it + N * P * out_it
                           + weight_streams * (w1.size + w2.size) * w_it
                           + (b1.size + b2.size) * 4),
    )

    if n_h_tiles == 1:
        # Weight-resident fast path: constant block index -> w1/b1/w2/b2 are DMA'd from HBM
        # exactly once and stay in VMEM across all token tiles; no accumulator scratch.
        kernel = functools.partial(_ffn_kernel_resident, approx_gelu=approximate_gelu)
        grid_spec = pltpu.PrefetchScalarGridSpec(
            num_scalar_prefetch=0,
            grid=(int(n_token_tiles),),
            in_specs=[
                pl.BlockSpec((tm_eff, P), lambda i: (i, 0)),   # x tile
                pl.BlockSpec((P, H), lambda i: (0, 0)),        # w1 (resident)
                pl.BlockSpec((1, H), lambda i: (0, 0)),        # b1 (resident)
                pl.BlockSpec((H, P), lambda i: (0, 0)),        # w2 (resident)
                pl.BlockSpec((1, P), lambda i: (0, 0)),        # b2 (resident)
            ],
            out_specs=pl.BlockSpec((tm_eff, P), lambda i: (i, 0)),
        )
        dim_sem = ("parallel",)
    else:
        # Streamed path for models whose weights exceed the VMEM budget.
        kernel = functools.partial(_ffn_kernel_streamed, approx_gelu=approximate_gelu)
        grid_spec = pltpu.PrefetchScalarGridSpec(
            num_scalar_prefetch=0,
            grid=(int(n_token_tiles), int(n_h_tiles)),
            in_specs=[
                pl.BlockSpec((tm_eff, P), lambda i, h: (i, 0)),     # x tile (resident over H)
                pl.BlockSpec((P, th_eff), lambda i, h: (0, h)),     # w1 slab
                pl.BlockSpec((1, th_eff), lambda i, h: (0, h)),     # b1 slab
                pl.BlockSpec((th_eff, P), lambda i, h: (h, 0)),     # w2 slab
                pl.BlockSpec((1, P), lambda i, h: (0, 0)),          # b2
            ],
            out_specs=pl.BlockSpec((tm_eff, P), lambda i, h: (i, 0)),
            scratch_shapes=[pltpu.VMEM((tm_eff, P), jnp.float32)],
        )
        dim_sem = ("parallel", "arbitrary")

    out = pl.pallas_call(
        kernel,
        out_shape=jax.ShapeDtypeStruct((N, P), out_dtype),
        grid_spec=grid_spec,
        compiler_params=pltpu.CompilerParams(
            dimension_semantics=dim_sem,
            vmem_limit_bytes=int(budget),
        ),
        cost_estimate=cost,
    )(x2, w1c, b1_2d, w2c, b2_2d)

    return out.reshape(B, S, P)


def init_params(key, projection_dim, hidden_dim_factor):
    """Deterministic init mimicking torch.nn.Linear (uniform +/- 1/sqrt(fan_in))."""
    P = projection_dim
    H = int(hidden_dim_factor * projection_dim)
    k1, k2, k3, k4 = jax.random.split(key, 4)
    lim1 = 1.0 / jnp.sqrt(P)
    lim2 = 1.0 / jnp.sqrt(H)
    # Stored as (in_features, out_features) so the kernel does x @ w.
    w1 = jax.random.uniform(k1, (P, H), jnp.float32, -lim1, lim1)
    b1 = jax.random.uniform(k2, (H,), jnp.float32, -lim1, lim1)
    w2 = jax.random.uniform(k3, (H, P), jnp.float32, -lim2, lim2)
    b2 = jax.random.uniform(k4, (P,), jnp.float32, -lim2, lim2)
    return w1, b1, w2, b2


def _reference(x, w1, b1, w2, b2):
    h = x @ w1 + b1
    h = 0.5 * h * (1.0 + jax.lax.erf(h / jnp.sqrt(2.0)))
    return h @ w2 + b2


if __name__ == "__main__":
    projection_dim = 32
    hidden_dim_factor = 2.0
    B, S = 2, 8  # 16 tokens

    key = jax.random.PRNGKey(0)
    kx, kp = jax.random.split(key)
    x = jax.random.normal(kx, (B, S, projection_dim), dtype=jnp.float32)
    w1, b1, w2, b2 = init_params(kp, projection_dim, hidden_dim_factor)
    ref = _reference(x, w1, b1, w2, b2)

    # Exact-math path (f32 operands, weight-resident kernel) -- tight tolerance.
    out_f32 = jax.block_until_ready(
        feed_forward(x, w1, b1, w2, b2, compute_dtype=jnp.float32))
    assert out_f32.shape == (B, S, projection_dim)
    assert jnp.allclose(out_f32, ref, atol=1e-5, rtol=1e-5), "f32 path mismatch vs reference"

    # Production path (bf16 MXU operands, f32 accumulation) -- bf16-level tolerance.
    out_bf16 = jax.block_until_ready(feed_forward(x, w1, b1, w2, b2))
    assert out_bf16.shape == (B, S, projection_dim)
    assert jnp.allclose(out_bf16, ref, atol=3e-2, rtol=3e-2), "bf16 path mismatch vs reference"

    # Forced hidden-dim streaming (exercises the f32-accumulator kernel path).
    B2, S2, P2 = 2, 64, 128
    x2 = jax.random.normal(jax.random.PRNGKey(1), (B2, S2, P2), dtype=jnp.float32)
    w1b, b1b, w2b, b2b = init_params(jax.random.PRNGKey(2), P2, 2.0)
    ref2 = _reference(x2, w1b, b1b, w2b, b2b)
    out2 = jax.block_until_ready(
        feed_forward(x2, w1b, b1b, w2b, b2b, th=128, compute_dtype=jnp.float32))
    assert jnp.allclose(out2, ref2, atol=1e-4, rtol=1e-4), "streamed path mismatch vs reference"

    print("KERNEL_OK")
</pallas_src>

<mosaic_0001>
module attributes {stable_mosaic.version = 11 : i64} {
  func.func @_ffn_kernel_resident(%arg0: i32, %arg1: memref<16x32xf32, #tpu.memory_space<vmem>>, %arg2: memref<32x64xf32, #tpu.memory_space<vmem>>, %arg3: memref<1x64xf32, #tpu.memory_space<vmem>>, %arg4: memref<64x32xf32, #tpu.memory_space<vmem>>, %arg5: memref<1x32xf32, #tpu.memory_space<vmem>>, %arg6: memref<16x32xf32, #tpu.memory_space<vmem>>) attributes {dimension_semantics = [#tpu.dimension_semantics<parallel>], iteration_bounds = array<i64: 1>, scalar_prefetch = 0 : i64, scratch_operands = 0 : i64, tpu.core_type = #tpu.core_type<tc>, window_params = [{transform_indices = @transform_0, window_bounds = array<i64: 16, 32>}, {pipeline_mode = #tpu.pipeline_mode<synchronous>, transform_indices = @transform_1, window_bounds = array<i64: 32, 64>}, {pipeline_mode = #tpu.pipeline_mode<synchronous>, transform_indices = @transform_2, window_bounds = array<i64: 1, 64>}, {pipeline_mode = #tpu.pipeline_mode<synchronous>, transform_indices = @transform_3, window_bounds = array<i64: 64, 32>}, {pipeline_mode = #tpu.pipeline_mode<synchronous>, transform_indices = @transform_4, window_bounds = array<i64: 1, 32>}, {transform_indices = @transform_5, window_bounds = array<i64: 16, 32>}]} {
    %c0 = arith.constant 0 : index
    %c0_0 = arith.constant 0 : index
    %0 = vector.load %arg1[%c0, %c0_0] : memref<16x32xf32, #tpu.memory_space<vmem>>, vector<16x32xf32>
    %c0_1 = arith.constant 0 : index
    %c0_2 = arith.constant 0 : index
    %1 = vector.load %arg2[%c0_1, %c0_2] : memref<32x64xf32, #tpu.memory_space<vmem>>, vector<32x64xf32>
    %cst = arith.constant dense<0.000000e+00> : vector<16x64xf32>
    %2 = tpu.matmul %0, %1, %cst {dimension_numbers = #tpu.dot_dimension_numbers<[1], [0], [0], [1], [0, 0, 1, 1], [], []>} : vector<16x32xf32>, vector<32x64xf32>, vector<16x64xf32> -> vector<16x64xf32>
    %c0_3 = arith.constant 0 : index
    %c0_4 = arith.constant 0 : index
    %3 = vector.load %arg3[%c0_3, %c0_4] : memref<1x64xf32, #tpu.memory_space<vmem>>, vector<1x64xf32>
    %4 = vector.broadcast %3 : vector<1x64xf32> to vector<16x64xf32>
    %5 = arith.addf %2, %4 : vector<16x64xf32>
    %cst_5 = arith.constant 5.000000e-01 : f32
    %6 = vector.broadcast %cst_5 : f32 to vector<16x64xf32>
    %7 = arith.mulf %6, %5 : vector<16x64xf32>
    %cst_6 = arith.constant 0.707106769 : f32
    %8 = vector.broadcast %cst_6 : f32 to vector<16x64xf32>
    %9 = arith.mulf %5, %8 : vector<16x64xf32>
    %10 = math.erf %9 : vector<16x64xf32>
    %cst_7 = arith.constant 1.000000e+00 : f32
    %11 = vector.broadcast %cst_7 : f32 to vector<16x64xf32>
    %12 = arith.addf %11, %10 : vector<16x64xf32>
    %13 = arith.mulf %7, %12 : vector<16x64xf32>
    %c0_8 = arith.constant 0 : index
    %c0_9 = arith.constant 0 : index
    %14 = vector.load %arg4[%c0_8, %c0_9] : memref<64x32xf32, #tpu.memory_space<vmem>>, vector<64x32xf32>
    %cst_10 = arith.constant dense<0.000000e+00> : vector<16x32xf32>
    %15 = tpu.matmul %13, %14, %cst_10 {dimension_numbers = #tpu.dot_dimension_numbers<[1], [0], [0], [1], [0, 0, 1, 1], [], []>} : vector<16x64xf32>, vector<64x32xf32>, vector<16x32xf32> -> vector<16x32xf32>
    %c0_11 = arith.constant 0 : index
    %c0_12 = arith.constant 0 : index
    %16 = vector.load %arg5[%c0_11, %c0_12] : memref<1x32xf32, #tpu.memory_space<vmem>>, vector<1x32xf32>
    %17 = vector.broadcast %16 : vector<1x32xf32> to vector<16x32xf32>
    %18 = arith.addf %15, %17 : vector<16x32xf32>
    %c0_13 = arith.constant 0 : index
    %c0_14 = arith.constant 0 : index
    %19 = vector.load %arg6[%c0_13, %c0_14] : memref<16x32xf32, #tpu.memory_space<vmem>>, vector<16x32xf32>
    tpu.vector_store %arg6[%c0_13, %c0_14], %18 {strides = array<i32>} : memref<16x32xf32, #tpu.memory_space<vmem>>, vector<16x32xf32>,
    return
  }
  func.func @transform_0(%arg0: i32) -> (i32, i32) {
    %c0_i32 = arith.constant 0 : i32
    %c0_i32_0 = arith.constant 0 : i32
    return %arg0, %c0_i32 : i32, i32
  }
  func.func @transform_1(%arg0: i32) -> (i32, i32) {
    %c0_i32 = arith.constant 0 : i32
    %c0_i32_0 = arith.constant 0 : i32
    %c0_i32_1 = arith.constant 0 : i32
    return %c0_i32, %c0_i32_0 : i32, i32
  }
  func.func @transform_2(%arg0: i32) -> (i32, i32) {
    %c0_i32 = arith.constant 0 : i32
    %c0_i32_0 = arith.constant 0 : i32
    %c0_i32_1 = arith.constant 0 : i32
    return %c0_i32, %c0_i32_0 : i32, i32
  }
  func.func @transform_3(%arg0: i32) -> (i32, i32) {
    %c0_i32 = arith.constant 0 : i32
    %c0_i32_0 = arith.constant 0 : i32
    %c0_i32_1 = arith.constant 0 : i32
    return %c0_i32, %c0_i32_0 : i32, i32
  }
  func.func @transform_4(%arg0: i32) -> (i32, i32) {
    %c0_i32 = arith.constant 0 : i32
    %c0_i32_0 = arith.constant 0 : i32
    %c0_i32_1 = arith.constant 0 : i32
    return %c0_i32, %c0_i32_0 : i32, i32
  }
  func.func @transform_5(%arg0: i32) -> (i32, i32) {
    %c0_i32 = arith.constant 0 : i32
    %c0_i32_0 = arith.constant 0 : i32
    return %arg0, %c0_i32 : i32, i32
  }
}

</mosaic_0001>

<bundles_post_ra>
// kernel: feed_forward.1
= control target key start
LH: loop header
LB: loop body
LE: loop exit
PB: predicated region body
PF: predicated region fallthrough
CT: control target
= control target key end

     0   :  { %vm34_vm0 = vcmask 261120   ;;  %s410_s0 = inlined_call_operand.vmem [shape: f32[16,32], index: 0, kind: input, shape index: {}]   ;;  %s411_s1 = inlined_call_operand.vmem [shape: f32[32,64], index: 1, kind: input, shape index: {}]   ;;  %s412_s2 = inlined_call_operand.vmem [shape: f32[1,64], index: 2, kind: input, shape index: {}]   ;;  %s413_s3 = inlined_call_operand.vmem [shape: f32[64,32], index: 3, kind: input, shape index: {}]   ;;  %s414_s4 = inlined_call_operand.vmem [shape: f32[1,32], index: 4, kind: input, shape index: {}]   ;;  %s415_s5 = inlined_call_operand.hbm [shape: f32[16,32], index: 5, kind: output, shape index: {}]  }
   0x1   :  { %v26_v0 = vld [vmem:[%s411_s1 + $0x18] sm:$0xff]  ;;  %v25_v1 = vld [vmem:[%s411_s1 + $0x10] sm:$0xff]  ;;  %v21_v2 = vld [vmem:[%s410_s0] sm:$0xff] }
   0x2   :  { %263 = vmatprep.subr.mxu0 %v26_v0  ;;  %v24_v3 = vld [vmem:[%s411_s1 + $0x8] sm:$0xff]  ;;  %271 = vmatprep.mubr.msk.f32.mxu0 %vm34_vm0, %v21_v2 }
   0x3   :  { %264 = vmatpush3.msra.mxu0 %v26_v0 }
   0x4   :  { %10 = vsyncpa [#allocation3], 0  ;;  %265 = vmatprep.subr.mxu0 %v25_v1  ;;  %v23_v4 = vld [vmem:[%s411_s1] sm:$0xff]  ;;  %v22_v5 = vld [vmem:[%s410_s0 + $0x8] sm:$0xff]  ;;  %vm141_vm1 = vcmask 523264   ;;  %s322_s21 = smov [#allocation2]  }
   0x5   :  { %266 = vmatpush3.msra.mxu0 %v25_v1  ;;  %v133_v6 = vld [vmem:[%s413_s3 + $0x38] sm:$0xff]  ;;  %v132_v7 = vld [vmem:[%s413_s3 + $0x30] sm:$0xff]  ;;  %v131_v8 = vld [vmem:[%s413_s3 + $0x28] sm:$0xff]  ;;  %s230_s22 = sshll.u32 %s322_s21, 4  ;;  %s231_s22 = int_to_ptr.vmem [resolvable:$true] %s230_s22 }
   0x6   :  { %267 = vmatprep.subr.mxu0 %v24_v3  ;;  %274 = vmatprep.subr.mxu1 %v133_v6  ;;  %v130_v9 = vld [vmem:[%s413_s3 + $0x20] sm:$0xff]  ;;  %v129_v10 = vld [vmem:[%s413_s3 + $0x18] sm:$0xff]  ;;  %v128_v11 = vld [vmem:[%s413_s3 + $0x10] sm:$0xff]  ;;  %s300_s23 = scalar_lea.vmem %s231_s22, 256  ;;  %p305_p1 = scmp.lt.s32.totalorder %s231_s22, %s231_s22 }
   0x7   :  { %268 = vmatpush3.msra.mxu0 %v24_v3  ;;  %275 = vmatpush3.msra.mxu1 %v133_v6  ;;  %v127_v12 = vld [vmem:[%s413_s3 + $0x8] sm:$0xff]  ;;  %v126_v13 = vld [vmem:[%s413_s3] sm:$0xff]  ;;  %p301_p0 = scmp.ne.s32.totalorder %s231_s22, %s300_s23  ;;  %p306_p2 = scmp.lt.s32.totalorder %s300_s23, %s300_s23 }
   0x8   :  { %269 = vmatprep.subr.mxu0 %v23_v4  ;;  %276 = vmatprep.subr.mxu1 %v132_v7  ;;  %v241_v14 = vld [vmem:[%s412_s2] ss:$0 sm:$0xff] }
   0x9   :  { %270 = vmatpush3.msra.mxu0 %v23_v4  ;;  %277 = vmatpush3.msra.mxu1 %v132_v7  ;;  %v244_v29 = vld [vmem:[%s414_s4] ss:$0 sm:$0xff]  ;;  %p307_p3 = por %p306_p2, %p305_p1 }
   0xa   :  { %272 = vmatmul.mubr.msk.f32.vlgmr.msra.gmra.mxu0 %vm34_vm0, %v22_v5  ;;  %278 = vmatprep.subr.mxu1 %v131_v8 }
   0xb   :  { %279 = vmatpush3.msra.mxu1 %v131_v8  ;;  %p308_p4 = pnand %p307_p3, %p301_p0 }
   0xc   :  { %280 = vmatprep.subr.mxu1 %v130_v9 }
   0xd   :  { %281 = vmatpush3.msra.mxu1 %v130_v9 }
   0xe   :  { %282 = vmatprep.subr.mxu1 %v129_v10 }
   0xf   :  { %283 = vmatpush3.msra.mxu1 %v129_v10 }
  0x10   :  { %284 = vmatprep.subr.mxu1 %v128_v11 }
  0x11   :  { %285 = vmatpush3.msra.mxu1 %v128_v11 }
  0x12   :  { %286 = vmatprep.subr.mxu1 %v127_v12 }
  0x13   :  { %287 = vmatpush3.msra.mxu1 %v127_v12 }
  0x14   :  { %288 = vmatprep.subr.mxu1 %v126_v13 }
  0x15   :  { %289 = vmatpush3.msra.mxu1 %v126_v13 }
  0xca   :  { %v273_v15 = vpop.f32.mrf.mxu0 }
  0xcb   :  { %v113_v16 = vadd.f32 %v273_v15, %v241_v14 }
  0xcc   :  { %v107_v17 = vpop.f32.mrf.mxu0 }
  0xcd   :  { %v119_v18 = vmul.f32 0.70710677, %v113_v16  ;;  %v108_v19 = vadd.f32 %v241_v14, %v107_v17  ;;  %v117_v26 = vmul.f32 0.5, %v113_v16 }
  0xcf   :  { %296 = verf.f32 %v119_v18  ;;  %v118_v20 = vmul.f32 0.70710677, %v108_v19  ;;  %v116_v24 = vmul.f32 0.5, %v108_v19 }
  0xd1   :  { %298 = verf.f32 %v118_v20 }
  0xdc   :  { %v297_v21 = vpop.eup %296 }
  0xdd   :  { %v123_v23 = vadd.f32 1.0, %v297_v21 }
  0xde   :  { %v299_v22 = vpop.eup %298 }
  0xdf   :  { %v122_v25 = vadd.f32 1.0, %v299_v22  ;;  %v125_v28 = vmul.f32 %v123_v23, %v117_v26 }
  0xe1   :  { %v124_v27 = vmul.f32 %v122_v25, %v116_v24 }
  0xe3   :  { %290 = vmatprep.mubr.msk.f32.mxu1 %vm141_vm1, %v124_v27 }
  0xe4   :  { %291 = vmatmul.mubr.msk.f32.vlgmr.msra.gmra.mxu1 %vm141_vm1, %v125_v28 }
 0x1a4   :  { %v292_v30 = vpop.f32.mrf.mxu1 }
 0x1a5   :  { %v220_v31 = vadd.f32 %v292_v30, %v244_v29 }
 0x1a6   :  { %v214_v32 = vpop.f32.mrf.mxu1 }
 0x1a7   :  { %224 = vst.msk [vmem:[#allocation2 + $0x8] sm:$0xff] %vm34_vm0, %v220_v31  ;;  %v215_v33 = vadd.f32 %v244_v29, %v214_v32 }
 0x1a9   :  { %223 = vst.msk [vmem:[#allocation2] sm:$0xff] %vm34_vm0, %v215_v33 }
 0x1aa   :  { %311 = shalt.err (!%p308_p4)
}
 0x1ab   :  { %s323_s24 = smov 128   ;;  %s324_s4 = smov 8  }
 0x1ac   :  { %236 = dma.vmem_to_hbm [thread:$0]  %s231_s22, 256, %s415_s5, [#allocation3], %s323_s24, %s323_s24, %s324_s4  }
 0x1ad   :  { %320 = dma.done.wait [#allocation3], 256  }
 0x1ae   :  { %321 = vsyncadd [#allocation3], 4294967040 }
 0x1af   :  { %240 = vsyncpa [#allocation3], 1 }

</bundles_post_ra>
